<compile_context>
chip_gen: v7x
topology: tpu7x:2x2x1
jax: 0.10.0
libtpu: 0.0.40
codegen_flags: <defaults>
</compile_context>

<pallas_src>
import math

import jax
import jax.numpy as jnp
from jax.experimental import pallas as pl
from jax.experimental.pallas import tpu as pltpu


def _xavier_uniform(key, fan_out, fan_in, dtype=jnp.float32):
    """Xavier/Glorot uniform init (torch.nn.init.xavier_uniform_), [out, in]."""
    bound = math.sqrt(6.0 / (fan_in + fan_out))
    return jax.random.uniform(key, (fan_out, fan_in), dtype, -bound, bound)


def _bias_init(key, fan_out, fan_in, dtype=jnp.float32):
    """PyTorch Linear default bias init: U(-1/sqrt(fan_in), 1/sqrt(fan_in))."""
    bound = 1.0 / math.sqrt(max(fan_in, 1))
    return jax.random.uniform(key, (fan_out,), dtype, -bound, bound)


def make_vanilla_network_params(n_hidden, nodes, seed=0):
    """Deterministic parameters for VanillaNetwork.

    Layers: Linear(1, nodes[0]) -> ReLU,
            [Linear(nodes[i], nodes[i+1]) -> ReLU for i in range(n_hidden)],
            Linear(nodes[-1], 1).
    Returns list of (W[out, in], b[out]) tuples (PyTorch orientation).
    """
    key = jax.random.PRNGKey(seed)
    layer_dims = [(1, nodes[0])]
    for i in range(n_hidden):
        layer_dims.append((nodes[i], nodes[i + 1]))
    layer_dims.append((nodes[-1], 1))

    params = []
    for (fi, fo) in layer_dims:
        key, kw, kb = jax.random.split(key, 3)
        W = _xavier_uniform(kw, fo, fi)
        b = _bias_init(kb, fo, fi)
        params.append((W, b))
    return params


def vanilla_network_forward(x, params, batch_tile=1024):
    """Full MLP forward pass in a single batch-tiled Pallas kernel.

    x: [B, 1] float32 -> returns [B, 1] float32.
    """
    B = x.shape[0]
    n_layers = len(params)

    # Lane-dense compute layout: activations are [features, batch_tile].
    # Pad batch up to a multiple of 128 (vreg lane width), then to the tile.
    B_pad = max(pl.cdiv(B, 128) * 128, 128)
    tile = min(batch_tile, B_pad)
    B_pad = pl.cdiv(B_pad, tile) * tile
    grid = (B_pad // tile,)

    # x: [B, 1] -> [1, B_pad] (batch on lanes); padded columns are sliced off.
    x_t = jnp.pad(x.T.astype(jnp.float32), ((0, 0), (0, B_pad - B)))

    # Kernel-side parameter layout:
    #   first layer : W0 [n0, 1],      b0 [n0, 1]   (K=1 -> VPU outer product)
    #   hidden      : W  [out, in],    b  [out, 1]  (MXU, N = batch_tile)
    #   last layer  : Wl [n_last, 1],  bl [1, 1]    (VPU mul + sublane reduce)
    flat_inputs = [x_t]
    for i, (W, b) in enumerate(params):
        if i == n_layers - 1:
            flat_inputs.append(W.T)                 # [in, 1]
            flat_inputs.append(b.reshape(1, 1))     # [1, 1]
        else:
            flat_inputs.append(W)                   # [out, in]
            flat_inputs.append(b.reshape(-1, 1))    # [out, 1]

    def kernel(*refs):
        x_ref = refs[0]
        o_ref = refs[-1]

        # First layer (K=1): VPU broadcast outer product, keep MXU free.
        w0 = refs[1][...]                           # [n0, 1]
        b0 = refs[2][...]                           # [n0, 1]
        h = jnp.maximum(w0 * x_ref[...] + b0, 0.0)  # [n0, tile]

        # Hidden layers: lane-dense MXU matmuls (M=out, K=in, N=tile).
        for i in range(1, n_layers - 1):
            w = refs[1 + 2 * i][...]                # [out, in]
            b = refs[2 + 2 * i][...]                # [out, 1]
            h = jnp.maximum(
                jnp.dot(w, h, preferred_element_type=jnp.float32) + b, 0.0)

        # Last layer (out=1): VPU mul + sublane reduction (XLU), no masked N=1
        # matmul and the output stays lane-dense [1, tile].
        wl = refs[1 + 2 * (n_layers - 1)][...]      # [n_last, 1]
        bl = refs[2 + 2 * (n_layers - 1)][...]      # [1, 1]
        o_ref[...] = (jnp.sum(wl * h, axis=0, keepdims=True) + bl).astype(o_ref.dtype)

    # x / out are tiled along batch; weights & biases get constant index maps
    # (full-array blocks, DMA'd once and kept resident in VMEM).
    in_specs = [pl.BlockSpec((1, tile), lambda i: (0, i))]
    for arr in flat_inputs[1:]:
        in_specs.append(pl.BlockSpec(arr.shape, lambda i: (0, 0)))
    out_specs = pl.BlockSpec((1, tile), lambda i: (0, i))

    flops = 2 * B_pad * sum(int(W.shape[0]) * int(W.shape[1]) for W, _ in params)
    bytes_accessed = 4 * (2 * B_pad + sum(int(W.size) + int(b.size) for W, b in params))
    cost = pl.CostEstimate(flops=flops, transcendentals=0,
                           bytes_accessed=bytes_accessed)

    out_t = pl.pallas_call(
        kernel,
        out_shape=jax.ShapeDtypeStruct((1, B_pad), jnp.float32),
        grid=grid,
        in_specs=in_specs,
        out_specs=out_specs,
        compiler_params=pltpu.CompilerParams(dimension_semantics=("parallel",)),
        cost_estimate=cost,
    )(*flat_inputs)

    # Back to the module's [B, 1] layout.
    return out_t[:, :B].T


def vanilla_network_ref(x, params):
    """Pure-JAX reference (PyTorch semantics: y = x @ W.T + b)."""
    h = x
    for i, (W, b) in enumerate(params):
        y = h @ W.T + b
        h = jnp.maximum(y, 0.0) if i < len(params) - 1 else y
    return h


if __name__ == "__main__":
    # Small config: 2 hidden layers, nodes = [32, 32, 32].
    n_hidden = 2
    nodes = [32, 32, 32]
    params = make_vanilla_network_params(n_hidden, nodes, seed=0)

    key = jax.random.PRNGKey(0)
    B = 300  # non-multiple of 128 to exercise padding; tile=128 -> 3 grid steps
    x = jax.random.normal(key, (B, 1), dtype=jnp.float32)

    out = vanilla_network_forward(x, params, batch_tile=128)
    out = jax.block_until_ready(out)

    ref = vanilla_network_ref(x, params)
    assert out.shape == (B, 1), out.shape
    assert jnp.allclose(out, ref, atol=1e-5, rtol=1e-5), (
        float(jnp.max(jnp.abs(out - ref))))

    print("KERNEL_OK")
</pallas_src>

<mosaic_0001>
module attributes {stable_mosaic.version = 11 : i64} {
  func.func @kernel(%arg0: i32, %arg1: memref<1x128xf32, #tpu.memory_space<vmem>>, %arg2: memref<32x1xf32, #tpu.memory_space<vmem>>, %arg3: memref<32x1xf32, #tpu.memory_space<vmem>>, %arg4: memref<32x32xf32, #tpu.memory_space<vmem>>, %arg5: memref<32x1xf32, #tpu.memory_space<vmem>>, %arg6: memref<32x32xf32, #tpu.memory_space<vmem>>, %arg7: memref<32x1xf32, #tpu.memory_space<vmem>>, %arg8: memref<32x1xf32, #tpu.memory_space<vmem>>, %arg9: memref<1x1xf32, #tpu.memory_space<vmem>>, %arg10: memref<1x128xf32, #tpu.memory_space<vmem>>) attributes {dimension_semantics = [#tpu.dimension_semantics<parallel>], iteration_bounds = array<i64: 3>, scalar_prefetch = 0 : i64, scratch_operands = 0 : i64, tpu.core_type = #tpu.core_type<tc>, window_params = [{transform_indices = @transform_0, window_bounds = array<i64: 1, 128>}, {pipeline_mode = #tpu.pipeline_mode<synchronous>, transform_indices = @transform_1, window_bounds = array<i64: 32, 1>}, {pipeline_mode = #tpu.pipeline_mode<synchronous>, transform_indices = @transform_2, window_bounds = array<i64: 32, 1>}, {pipeline_mode = #tpu.pipeline_mode<synchronous>, transform_indices = @transform_3, window_bounds = array<i64: 32, 32>}, {pipeline_mode = #tpu.pipeline_mode<synchronous>, transform_indices = @transform_4, window_bounds = array<i64: 32, 1>}, {pipeline_mode = #tpu.pipeline_mode<synchronous>, transform_indices = @transform_5, window_bounds = array<i64: 32, 32>}, {pipeline_mode = #tpu.pipeline_mode<synchronous>, transform_indices = @transform_6, window_bounds = array<i64: 32, 1>}, {pipeline_mode = #tpu.pipeline_mode<synchronous>, transform_indices = @transform_7, window_bounds = array<i64: 32, 1>}, {pipeline_mode = #tpu.pipeline_mode<synchronous>, transform_indices = @transform_8, window_bounds = array<i64: 1, 1>}, {transform_indices = @transform_9, window_bounds = array<i64: 1, 128>}]} {
    %c0 = arith.constant 0 : index
    %c0_0 = arith.constant 0 : index
    %0 = vector.load %arg2[%c0, %c0_0] : memref<32x1xf32, #tpu.memory_space<vmem>>, vector<32x1xf32>
    %c0_1 = arith.constant 0 : index
    %c0_2 = arith.constant 0 : index
    %1 = vector.load %arg3[%c0_1, %c0_2] : memref<32x1xf32, #tpu.memory_space<vmem>>, vector<32x1xf32>
    %c0_3 = arith.constant 0 : index
    %c0_4 = arith.constant 0 : index
    %2 = vector.load %arg1[%c0_3, %c0_4] : memref<1x128xf32, #tpu.memory_space<vmem>>, vector<1x128xf32>
    %3 = vector.broadcast %0 : vector<32x1xf32> to vector<32x128xf32>
    %4 = vector.broadcast %2 : vector<1x128xf32> to vector<32x128xf32>
    %5 = arith.mulf %3, %4 : vector<32x128xf32>
    %6 = vector.broadcast %1 : vector<32x1xf32> to vector<32x128xf32>
    %7 = arith.addf %5, %6 : vector<32x128xf32>
    %cst = arith.constant 0.000000e+00 : f32
    %8 = vector.broadcast %cst : f32 to vector<32x128xf32>
    %9 = arith.maximumf %7, %8 : vector<32x128xf32>
    %c0_5 = arith.constant 0 : index
    %c0_6 = arith.constant 0 : index
    %10 = vector.load %arg4[%c0_5, %c0_6] : memref<32x32xf32, #tpu.memory_space<vmem>>, vector<32x32xf32>
    %c0_7 = arith.constant 0 : index
    %c0_8 = arith.constant 0 : index
    %11 = vector.load %arg5[%c0_7, %c0_8] : memref<32x1xf32, #tpu.memory_space<vmem>>, vector<32x1xf32>
    %cst_9 = arith.constant dense<0.000000e+00> : vector<32x128xf32>
    %12 = tpu.matmul %10, %9, %cst_9 {dimension_numbers = #tpu.dot_dimension_numbers<[1], [0], [0], [1], [0, 0, 1, 1], [], []>} : vector<32x32xf32>, vector<32x128xf32>, vector<32x128xf32> -> vector<32x128xf32>
    %13 = vector.broadcast %11 : vector<32x1xf32> to vector<32x128xf32>
    %14 = arith.addf %12, %13 : vector<32x128xf32>
    %cst_10 = arith.constant 0.000000e+00 : f32
    %15 = vector.broadcast %cst_10 : f32 to vector<32x128xf32>
    %16 = arith.maximumf %14, %15 : vector<32x128xf32>
    %c0_11 = arith.constant 0 : index
    %c0_12 = arith.constant 0 : index
    %17 = vector.load %arg6[%c0_11, %c0_12] : memref<32x32xf32, #tpu.memory_space<vmem>>, vector<32x32xf32>
    %c0_13 = arith.constant 0 : index
    %c0_14 = arith.constant 0 : index
    %18 = vector.load %arg7[%c0_13, %c0_14] : memref<32x1xf32, #tpu.memory_space<vmem>>, vector<32x1xf32>
    %cst_15 = arith.constant dense<0.000000e+00> : vector<32x128xf32>
    %19 = tpu.matmul %17, %16, %cst_15 {dimension_numbers = #tpu.dot_dimension_numbers<[1], [0], [0], [1], [0, 0, 1, 1], [], []>} : vector<32x32xf32>, vector<32x128xf32>, vector<32x128xf32> -> vector<32x128xf32>
    %20 = vector.broadcast %18 : vector<32x1xf32> to vector<32x128xf32>
    %21 = arith.addf %19, %20 : vector<32x128xf32>
    %cst_16 = arith.constant 0.000000e+00 : f32
    %22 = vector.broadcast %cst_16 : f32 to vector<32x128xf32>
    %23 = arith.maximumf %21, %22 : vector<32x128xf32>
    %c0_17 = arith.constant 0 : index
    %c0_18 = arith.constant 0 : index
    %24 = vector.load %arg8[%c0_17, %c0_18] : memref<32x1xf32, #tpu.memory_space<vmem>>, vector<32x1xf32>
    %c0_19 = arith.constant 0 : index
    %c0_20 = arith.constant 0 : index
    %25 = vector.load %arg9[%c0_19, %c0_20] : memref<1x1xf32, #tpu.memory_space<vmem>>, vector<1x1xf32>
    %26 = vector.broadcast %24 : vector<32x1xf32> to vector<32x128xf32>
    %27 = arith.mulf %26, %23 : vector<32x128xf32>
    %cst_21 = arith.constant dense<0.000000e+00> : vector<128xf32>
    %28 = vector.multi_reduction <add>, %27, %cst_21 [0] : vector<32x128xf32> to vector<128xf32>
    %29 = vector.shape_cast %28 : vector<128xf32> to vector<1x128xf32>
    %30 = vector.broadcast %25 : vector<1x1xf32> to vector<1x128xf32>
    %31 = arith.addf %29, %30 : vector<1x128xf32>
    %c0_22 = arith.constant 0 : index
    %c0_23 = arith.constant 0 : index
    %32 = vector.load %arg10[%c0_22, %c0_23] : memref<1x128xf32, #tpu.memory_space<vmem>>, vector<1x128xf32>
    tpu.vector_store %arg10[%c0_22, %c0_23], %31 {strides = array<i32>} : memref<1x128xf32, #tpu.memory_space<vmem>>, vector<1x128xf32>,
    return
  }
  func.func @transform_0(%arg0: i32) -> (i32, i32) {
    %c0_i32 = arith.constant 0 : i32
    %c0_i32_0 = arith.constant 0 : i32
    return %c0_i32, %arg0 : i32, i32
  }
  func.func @transform_1(%arg0: i32) -> (i32, i32) {
    %c0_i32 = arith.constant 0 : i32
    %c0_i32_0 = arith.constant 0 : i32
    %c0_i32_1 = arith.constant 0 : i32
    return %c0_i32, %c0_i32_0 : i32, i32
  }
  func.func @transform_2(%arg0: i32) -> (i32, i32) {
    %c0_i32 = arith.constant 0 : i32
    %c0_i32_0 = arith.constant 0 : i32
    %c0_i32_1 = arith.constant 0 : i32
    return %c0_i32, %c0_i32_0 : i32, i32
  }
  func.func @transform_3(%arg0: i32) -> (i32, i32) {
    %c0_i32 = arith.constant 0 : i32
    %c0_i32_0 = arith.constant 0 : i32
    %c0_i32_1 = arith.constant 0 : i32
    return %c0_i32, %c0_i32_0 : i32, i32
  }
  func.func @transform_4(%arg0: i32) -> (i32, i32) {
    %c0_i32 = arith.constant 0 : i32
    %c0_i32_0 = arith.constant 0 : i32
    %c0_i32_1 = arith.constant 0 : i32
    return %c0_i32, %c0_i32_0 : i32, i32
  }
  func.func @transform_5(%arg0: i32) -> (i32, i32) {
    %c0_i32 = arith.constant 0 : i32
    %c0_i32_0 = arith.constant 0 : i32
    %c0_i32_1 = arith.constant 0 : i32
    return %c0_i32, %c0_i32_0 : i32, i32
  }
  func.func @transform_6(%arg0: i32) -> (i32, i32) {
    %c0_i32 = arith.constant 0 : i32
    %c0_i32_0 = arith.constant 0 : i32
    %c0_i32_1 = arith.constant 0 : i32
    return %c0_i32, %c0_i32_0 : i32, i32
  }
  func.func @transform_7(%arg0: i32) -> (i32, i32) {
    %c0_i32 = arith.constant 0 : i32
    %c0_i32_0 = arith.constant 0 : i32
    %c0_i32_1 = arith.constant 0 : i32
    return %c0_i32, %c0_i32_0 : i32, i32
  }
  func.func @transform_8(%arg0: i32) -> (i32, i32) {
    %c0_i32 = arith.constant 0 : i32
    %c0_i32_0 = arith.constant 0 : i32
    %c0_i32_1 = arith.constant 0 : i32
    return %c0_i32, %c0_i32_0 : i32, i32
  }
  func.func @transform_9(%arg0: i32) -> (i32, i32) {
    %c0_i32 = arith.constant 0 : i32
    %c0_i32_0 = arith.constant 0 : i32
    return %c0_i32, %arg0 : i32, i32
  }
}

</mosaic_0001>

<bundles_post_ra>
// kernel: tpu_custom_call.1
= control target key start
LH: loop header
LB: loop body
LE: loop exit
PB: predicated region body
PF: predicated region fallthrough
CT: control target
= control target key end

     0   :  { %s1195_s0 = inlined_call_operand.vmem [shape: f32[1,384], index: 0, kind: input, shape index: {}]   ;;  %s1196_s1 = inlined_call_operand.vmem [shape: f32[32,1], index: 1, kind: input, shape index: {}]   ;;  %s1197_s2 = inlined_call_operand.vmem [shape: f32[32,1], index: 2, kind: input, shape index: {}]   ;;  %s1198_s3 = inlined_call_operand.vmem [shape: f32[32,32], index: 3, kind: input, shape index: {}]   ;;  %s1199_s4 = inlined_call_operand.vmem [shape: f32[32,1], index: 4, kind: input, shape index: {}]   ;;  %s1200_s5 = inlined_call_operand.vmem [shape: f32[32,32], index: 5, kind: input, shape index: {}]   ;;  %s1201_s6 = inlined_call_operand.vmem [shape: f32[32,1], index: 6, kind: input, shape index: {}]   ;;  %s1202_s7 = inlined_call_operand.vmem [shape: f32[32,1], index: 7, kind: input, shape index: {}]   ;;  %s1203_s8 = inlined_call_operand.<no memory space> [shape: f32[1,1], index: 8, kind: input, shape index: {}]   ;;  %s1204_s9 = inlined_call_operand.hbm [shape: f32[1,384], index: 9, kind: output, shape index: {}]  }
   0x1   :  { %v14_v0 = vstv %s1203_s8 }
   0x2   :  { %15 = vst [vmem:[#allocation2] sm:$0x1] %v14_v0 }
   0x3   :  { %16 = vsyncpa [#allocation4], 0 }
   0x4   :  { %18 = vsyncpa [#allocation4 + $0x1], 0  ;;  %s1003_s11 = smov 0   ;;  %s1005_s12 = smov 0  }
   0x5   :  { %s1007_s13 = smov 0   ;;  %s1009_s14 = smov 0  }
   0x6 LB: > { %s1024_s8 = sadd.s32 4294967295, %s946_s14   ;;  %s766_s15 = sadd.s32 4294967294, %s946_s14   ;;  %s946_s14 = sphi %s1009_s14, %s1210_s14   ;;  %s942_s13 = sphi %s1007_s13, %s1209_s13   ;;  %s938_s12 = sphi %s1005_s12, %s1208_s12   ;;  %s934_s11 = sphi %s1003_s11, %s1207_s11  }
   0x7   : > { %s1028_s16 = sadd.s32 1, %s946_s14   ;;  %s225_s17 = sadd.s32 1, %s942_s13 }
   0x8   : > { %s222_s18 = ssub.s32 %s946_s14, %s1028_s16  ;;  %p235_p0 = scmp.ne.s32.totalorder %s942_s13, %s938_s12 }
   0x9   : > { %p223_p1 = scmp.eq.s32.totalorder %s222_s18, 0  ;;  %p236_p2 = scmp.eq.s32.totalorder %s1024_s8, 2 }
   0xa   : > { %p241_p3 = scmp.ne.s32.totalorder %s938_s12, %s934_s11  ;;  %p242_p4 = scmp.eq.s32.totalorder %s766_s15, 2 }
   0xb   : > { %s1039_s19 = scalar_select %p223_p1, %s942_s13, %s225_s17  }
   0xc   : > { %p1041_p5 = por %p236_p2, %p235_p0  ;;  %p1045_p6 = por %p242_p4, %p241_p3 }
   0xd   : > { %p769_p7 = scmp.ge.s32.totalorder %s946_s14, 1  ;;  %p290_p8 = scmp.lt.s32.totalorder %s946_s14, 4 }
   0xf   : > { %p291_p9 = pnand %p769_p7, %p290_p8 }
  0x10   : > { %v330_v1 = vld [vmem:[%s1197_s2] sm:$0xff] (!%p291_p9)  ;;  %v948_v3 = vmov (!%p291_p9), 0   ;;  %v331_v4 = vld [vmem:[%s1197_s2 + $0x8] sm:$0xff] (!%p291_p9)  ;;  %v329_v6 = vld [vmem:[%s1196_s1 + $0x18] sm:$0xff] (!%p291_p9)  ;;  %vm421_vm0 = vcmask (!%p291_p9), 261120   ;;  %p323_p10 = scmp.lt.s32.totalorder (!%p291_p9), %s1024_s8, 2 }
  0x11   : > { %294 = sbr.rel (%p291_p9) target bundleno = 650 (0x28a), region = 56  ;;  %v326_v2 = vld [vmem:[%s1196_s1] sm:$0xff] (!%p291_p9)  ;;  %883 = vset.pattern.permute.xlu1 (!%p291_p9), %v948_v3  ;;  %882 = vset.pattern.permute.xlu0 (!%p291_p9), %v948_v3  ;;  %v327_v5 = vld [vmem:[%s1196_s1 + $0x8] sm:$0xff] (!%p291_p9)  ;;  %v328_v7 = vld [vmem:[%s1196_s1 + $0x10] sm:$0xff] (!%p291_p9)  ;;  %s321_s30 = sand.u32 (!%p291_p9), 1, %s938_s12  }
  0x12   : > { %367 = vperm.xlu1 (!%p291_p9), %883, %v330_v1   ;;  %337 = vperm.xlu0 (!%p291_p9), %882, %v326_v2   ;;  %v333_v8 = vld [vmem:[%s1197_s2 + $0x18] sm:$0xff] (!%p291_p9)  ;;  %v332_v9 = vld [vmem:[%s1197_s2 + $0x10] sm:$0xff] (!%p291_p9)  ;;  %v398_v10 = vld [vmem:[%s1199_s4 + $0x8] sm:$0xff] (!%p291_p9)  ;;  %s779_s10 = sshll.u32 (!%p291_p9), %s1024_s8, 4  ;;  %s322_s15 = scalar_lea.vmem (!%p291_p9), [#allocation3], %s321_s30 }
  0x13   : > { %v397_v11 = vld [vmem:[%s1199_s4] sm:$0xff] (!%p291_p9)  ;;  %v400_v12 = vld [vmem:[%s1199_s4 + $0x18] sm:$0xff] (!%p291_p9)  ;;  %v399_v13 = vld [vmem:[%s1199_s4 + $0x10] sm:$0xff] (!%p291_p9)  ;;  %s714_s17 = sshll.u32 (!%p291_p9), %s322_s15, 4  ;;  %s1153_s23 = scalar_lea.hbm (!%p291_p9), %s1204_s9, %s779_s10  ;;  %s1155_s17 = int_to_ptr.vmem [resolvable:$true] %s714_s17 }
  0x14   : > { %v393_v14 = vld [vmem:[%s1198_s3] sm:$0xff] (!%p291_p9)  ;;  %v528_v15 = vld [vmem:[%s1201_s6 + $0x8] sm:$0xff] (!%p291_p9)  ;;  %v530_v17 = vld [vmem:[%s1201_s6 + $0x18] sm:$0xff] (!%p291_p9)  ;;  %s702_s24 = scalar_lea.sflag (!%p291_p9), [#allocation4], %s321_s30 }
  0x15   : > { %v527_v16 = vld [vmem:[%s1201_s6] sm:$0xff] (!%p291_p9)  ;;  %806 = vmatprep.mubr.msk.f32.mxu0 (!%p291_p9), %vm421_vm0, %v393_v14  ;;  %v529_v18 = vld [vmem:[%s1201_s6 + $0x10] sm:$0xff] (!%p291_p9)  ;;  %v653_v19 = vld [vmem:[%s1202_s7 + $0x8] sm:$0xff] (!%p291_p9) }
  0x16   : > { %372 = vperm.xlu1 (!%p291_p9), %883, %v331_v4   ;;  %342 = vperm.xlu0 (!%p291_p9), %882, %v327_v5   ;;  %v652_v20 = vld [vmem:[%s1202_s7] sm:$0xff] (!%p291_p9)  ;;  %v655_v21 = vld [vmem:[%s1202_s7 + $0x18] sm:$0xff] (!%p291_p9)  ;;  %v654_v22 = vld [vmem:[%s1202_s7 + $0x10] sm:$0xff] (!%p291_p9) }
  0x17   : > { %v656_v23 = vld [vmem:[#allocation2] sm:$0x1] (!%p291_p9)  ;;  %v394_v47 = vld [vmem:[%s1198_s3 + $0x8] sm:$0xff] (!%p291_p9)  ;;  %v395_v48 = vld [vmem:[%s1198_s3 + $0x10] sm:$0xff] (!%p291_p9) }
  0x18   : > { %s324_s25 = scalar_select %p323_p10, %s1024_s8, 2  ;;  %v396_v49 = vld [vmem:[%s1198_s3 + $0x18] sm:$0xff]  ;;  %v523_v50 = vld [vmem:[%s1200_s5] sm:$0xff]  ;;  %v524_v5 = vld [vmem:[%s1200_s5 + $0x8] sm:$0xff] }
  0x19   : > { %820 = vmatprep.mubr.msk.f32.mxu1 %vm421_vm0, %v523_v50  ;;  %s949_s8 = smov [#allocation3]  }
  0x1a   : > { %352 = vperm.xlu1 %883, %v329_v6   ;;  %347 = vperm.xlu0 %882, %v328_v7   ;;  %s325_s28 = scalar_lea.vmem %s1195_s0, %s324_s25  ;;  %v525_v6 = vld [vmem:[%s1200_s5 + $0x10] sm:$0xff]  ;;  %v526_v7 = vld [vmem:[%s1200_s5 + $0x18] sm:$0xff]  ;;  %s884_s25 = scalar_lea.vmem %s1155_s17, 16 }
  0x1b   : > { %v770_v24 = vld [vmem:[%s325_s28] ss:$0 sm:$0xff]  ;;  %p885_p11 = scmp.ne.s32.totalorder %s1155_s17, %s884_s25  ;;  %s888_s26 = sshll.u32 %s949_s8, 4  ;;  %s889_s26 = int_to_ptr.vmem [resolvable:$false] %s888_s26 }
  0x1c   : > { %s890_s27 = scalar_lea.vmem %s889_s26, 32  ;;  %p891_p0 = scmp.lt.s32.totalorder %s1155_s17, %s889_s26 }
  0x1d   : > { %p886_p12 = pnand %p885_p11, %p1041_p5  ;;  %p892_p1 = scmp.lt.s32.totalorder %s890_s27, %s884_s25 }
  0x1e   : > { %382 = vperm.xlu1 %883, %v333_v8   ;;  %377 = vperm.xlu0 %882, %v332_v9  }
  0x1f   : > { %p887_p13 = pneg %p886_p12  ;;  %p893_p2 = por %p892_p1, %p891_p0 }
  0x21   : > { %p894_p3 = pnand %p893_p2, %p887_p13 }
  0x22   : > { %408 = vperm.xlu1 %883, %v398_v10   ;;  %403 = vperm.xlu0 %882, %v397_v11  }
  0x26   : > { %418 = vperm.xlu1 %883, %v400_v12   ;;  %413 = vperm.xlu0 %882, %v399_v13  }
  0x2a   : > { %538 = vperm.xlu1 %883, %v528_v15   ;;  %533 = vperm.xlu0 %882, %v527_v16  }
  0x2e   : > { %548 = vperm.xlu1 %883, %v530_v17   ;;  %543 = vperm.xlu0 %882, %v529_v18  }
  0x32   : > { %664 = vperm.xlu1 %883, %v653_v19   ;;  %659 = vperm.xlu0 %882, %v652_v20  }
  0x36   : > { %674 = vperm.xlu1 %883, %v655_v21   ;;  %669 = vperm.xlu0 %882, %v654_v22  }
  0x3a   : > { %692 = vperm.xlu0 %882, %v656_v23  }
  0x91   : > { %v368_v25 = vpop.permute.xlu1 %367  ;;  %v338_v26 = vpop.permute.xlu0 %337 }
  0x92   : > { %v361_v27 = vmul.f32 %v770_v24, %v338_v26 }
  0x94   : > { %v385_v30 = vadd.f32 %v368_v25, %v361_v27 }
  0x95   : > { %v373_v28 = vpop.permute.xlu1 %372  ;;  %v343_v29 = vpop.permute.xlu0 %342 }
  0x96   : > { %v362_v31 = vmul.f32 %v770_v24, %v343_v29  ;;  %v389_v35 = vmax.f32 %v385_v30, 0.0 }
  0x98   : > { %v386_v32 = vadd.f32 %v373_v28, %v362_v31 }
  0x99   : > { %v353_v33 = vpop.permute.xlu1 %352  ;;  %v348_v34 = vpop.permute.xlu0 %347 }
  0x9a   : > { %v390_v36 = vmax.f32 %v386_v32, 0.0  ;;  %v364_v37 = vmul.f32 %v770_v24, %v353_v33  ;;  %v363_v38 = vmul.f32 %v770_v24, %v348_v34  ;;  %v695_v34 = vlaneseq }
  0x9c   : > { %v826_v39 = vpack.c.bf16 %v390_v36, %v389_v35 }
  0x9d   : > { %v383_v40 = vpop.permute.xlu1 %382  ;;  %v378_v41 = vpop.permute.xlu0 %377 }
  0x9e   : > { %v388_v42 = vadd.f32 %v383_v40, %v364_v37  ;;  %v387_v43 = vadd.f32 %v378_v41, %v363_v38  ;;  %827 = vmatprep.subr.bf16.mxu0 %v826_v39  ;;  %v696_v37 = vshrl.u32 %v695_v34, 7 }
  0x9f   : > { %829 = vmatpush3.bf16.msra.mxu0 %v826_v39 }
  0xa0   : > { %v392_v44 = vmax.f32 %v388_v42, 0.0  ;;  %v391_v45 = vmax.f32 %v387_v43, 0.0  ;;  %v697_v40 = vsub.s32 0, %v696_v37 }
  0xa1   : > { %v409_v51 = vpop.permute.xlu1 %408  ;;  %v404_v52 = vpop.permute.xlu0 %403 }
  0xa2   : > { %v830_v46 = vpack.c.bf16 %v392_v44, %v391_v45 }
  0xa4   : > { %831 = vmatprep.subr.bf16.mxu0 %v830_v46 }
  0xa5   : > { %833 = vmatpush3.bf16.msra.mxu0 %v830_v46  ;;  %v419_v58 = vpop.permute.xlu1 %418  ;;  %v414_v61 = vpop.permute.xlu0 %413 }
  0xa8   : > { %807 = vmatmul.mubr.msk.f32.vlgmr.msra.gmra.mrb[0].mxu0 %vm421_vm0, %v394_v47 }
  0xa9   : > { %809 = vmatprep.mubr.msk.f32.mxu0 %vm421_vm0, %v395_v48  ;;  %v534_v8 = vpop.permute.xlu0 %533  ;;  %v539_v9 = vpop.permute.xlu1 %538 }
  0xac   : > { %810 = vmatmul.mubr.msk.f32.gmra.mrb[2].mxu0 %vm421_vm0, %v396_v49 }
  0xad   : > { %v544_v10 = vpop.permute.xlu0 %543  ;;  %v549_v11 = vpop.permute.xlu1 %548 }
  0xb1   : > { %v660_v16 = vpop.permute.xlu0 %659  ;;  %v665_v18 = vpop.permute.xlu1 %664 }
  0xb5   : > { %v670_v29 = vpop.permute.xlu0 %669  ;;  %v675_v31 = vpop.permute.xlu1 %674 }
  0xb9   : > { %v693_v42 = vpop.permute.xlu0 %692 }
  0xba   : > { %v698_v44 = vrot.slane %v693_v42, %v697_v40 }
 0x17b   : > { %v808_v53 = vpop.f32.mrb[0].mxu0 }
 0x17c   : > { %v506_v54 = vadd.f32 %v808_v53, %v409_v51  ;;  %v500_v55 = vpop.f32.mrb[1].mxu0 }
 0x17d   : > { %v501_v56 = vadd.f32 %v500_v55, %v404_v52 }
 0x17e   : > { %v520_v57 = vmax.f32 %v506_v54, 0.0 }
 0x17f   : > { %v519_v59 = vmax.f32 %v501_v56, 0.0  ;;  %v811_v60 = vpop.f32.mrb[2].mxu0 }
 0x180   : > { %v516_v62 = vadd.f32 %v811_v60, %v419_v58  ;;  %v510_v63 = vpop.f32.mrb[3].mxu0 }
 0x181   : > { %v511_v0 = vadd.f32 %v510_v63, %v414_v61  ;;  %v834_v1 = vpack.c.bf16 %v520_v57, %v519_v59 }
 0x182   : > { %v522_v2 = vmax.f32 %v516_v62, 0.0 }
 0x183   : > { %v521_v3 = vmax.f32 %v511_v0, 0.0  ;;  %835 = vmatprep.subr.bf16.mxu1 %v834_v1 }
 0x184   : > { %837 = vmatpush3.bf16.msra.mxu1 %v834_v1 }
 0x185   : > { %v838_v4 = vpack.c.bf16 %v522_v2, %v521_v3 }
 0x187   : > { %839 = vmatprep.subr.bf16.mxu1 %v838_v4 }
 0x188   : > { %841 = vmatpush3.bf16.msra.mxu1 %v838_v4 }
 0x18b   : > { %821 = vmatmul.mubr.msk.f32.vlgmr.msra.gmra.mrb[0].mxu1 %vm421_vm0, %v524_v5 }
 0x18c   : > { %823 = vmatprep.mubr.msk.f32.mxu1 %vm421_vm0, %v525_v6 }
 0x18f   : > { %824 = vmatmul.mubr.msk.f32.gmra.mrb[2].mxu1 %vm421_vm0, %v526_v7 }
 0x25e   : > { %v822_v12 = vpop.f32.mrb[0].mxu1 }
 0x25f   : > { %v635_v13 = vadd.f32 %v822_v12, %v539_v9  ;;  %v629_v14 = vpop.f32.mrb[1].mxu1 }
 0x260   : > { %v630_v15 = vadd.f32 %v629_v14, %v534_v8 }
 0x261   : > { %v649_v17 = vmax.f32 %v635_v13, 0.0 }
 0x262   : > { %v648_v19 = vmax.f32 %v630_v15, 0.0  ;;  %v825_v20 = vpop.f32.mrb[2].mxu1 }
 0x263   : > { %v678_v21 = vmul.f32 %v665_v18, %v649_v17  ;;  %v645_v22 = vadd.f32 %v825_v20, %v549_v11  ;;  %v639_v23 = vpop.f32.mrb[3].mxu1 }
 0x264   : > { %v677_v24 = vmul.f32 %v660_v16, %v648_v19  ;;  %v640_v25 = vadd.f32 %v639_v23, %v544_v10 }
 0x265   : > { %v651_v27 = vmax.f32 %v645_v22, 0.0 }
 0x266   : > { %v681_v26 = vadd.f32 %v678_v21, %v677_v24  ;;  %v650_v28 = vmax.f32 %v640_v25, 0.0 }
 0x267   : > { %v680_v32 = vmul.f32 %v675_v31, %v651_v27 }
 0x268   : > { %v679_v30 = vmul.f32 %v670_v29, %v650_v28 }
 0x26a   : > { %v682_v33 = vadd.f32 %v681_v26, %v679_v30 }
 0x26c   : > { %v683_v35 = vadd.f32 %v682_v33, %v680_v32 }
 0x26e   : > { %v684_v36 = vrot.slane %v683_v35, 4 }
 0x270   : > { %v685_v38 = vadd.f32 %v684_v36, %v683_v35 }
 0x272   : > { %v686_v39 = vrot.slane %v685_v38, 2 }
 0x274   : > { %v687_v41 = vadd.f32 %v686_v39, %v685_v38 }
 0x276   : > { %v688_v43 = vrot.slane %v687_v41, 1 }
 0x278   : > { %v689_v45 = vadd.f32 %v688_v43, %v687_v41 }
 0x27a   : > { %v699_v46 = vadd.f32 %v698_v44, %v689_v45 }
 0x27c   : > { %700 = vst [vmem:[%s322_s15] sm:$0x1] %v699_v46 }
 0x27d   : > { %897 = shalt.err (!%p894_p3)
}
 0x27e   : > { %s898_s28 = scalar_lea.hbm %s1153_s23, 16  ;;  %s902_s10 = scalar_lea.hbm %s1204_s9, 48 }
 0x27f   : > { %p899_p4 = scmp.ne.s32.totalorder %s1153_s23, %s898_s28  ;;  %p903_p9 = scmp.lt.u32.totalorder %s1153_s23, %s1204_s9 }
 0x280   : > { %p904_p10 = scmp.lt.u32.totalorder %s902_s10, %s898_s28  ;;  %p906_p12 = scmp.lt.u32.totalorder %s898_s28, %s1153_s23 }
 0x281   : > { %p900_p7 = pnand %p899_p4, %p1041_p5 }
 0x282   : > { %p905_p11 = por %p904_p10, %p903_p9 }
 0x283   : > { %p901_p8 = pneg %p900_p7 }
 0x284   : > { %p907_p13 = por %p906_p12, %p905_p11 }
 0x286   : > { %p908_p0 = pnand %p907_p13, %p901_p8 }
 0x288   : > { %911 = shalt.err (!%p908_p0)
}
 0x289   : > { %842 = dma.vmem_to_hbm [thread:$0]  (%p1041_p5), %s1155_s17, 16, %s1153_s23, %s702_s24  }
 0x28a PF: > { %p848_p1 = scmp.ge.s32.totalorder %s946_s14, 2  ;;  %s726_s22 = sand.u32 1, %s934_s11  }
 0x28b   : > { %s727_s25 = scalar_lea.sflag [#allocation4], %s726_s22 }
 0x28c   : > { %p845_p2 = pnand %p848_p1, %p1045_p6 }
 0x28e   : > { %929 = dma.done.wait (!%p845_p2), %s727_s25, 16  }
 0x28f   : > { %931 = vsyncadd (!%p845_p2), %s727_s25, 4294967280  ;;  %p21_p3 = scmp.ge.s32.totalorder %s1028_s16, 5   ;;  %s1207_s11 = smov %s938_s12 }
 0x290   : > { %s1208_s12 = smov %s942_s13  ;;  %s1209_s13 = smov %s1039_s19 }
 0x291   : > { %s1210_s14 = smov %s1028_s16  ;;  %23 = sbr.rel (!%p21_p3) target bundleno = 6 (0x6), region = 91 }
 0x298   :  { %731 = vsyncpa [#allocation4], 1 }
 0x299   :  { %733 = vsyncpa [#allocation4 + $0x1], 1 }

</bundles_post_ra>
